<compile_context>
chip_gen: v5e
topology: v5e:2x2
jax: 0.10.0
libtpu: 0.0.40
codegen_flags: <defaults>
</compile_context>

<pallas_src>
import numpy as np
import jax
import jax.numpy as jnp
from jax import lax
from jax.experimental import pallas as pl
from jax.experimental.pallas import tpu as pltpu

NUM_BANDS = 4
N = 2
H = W = 6            # conv(3x3 valid) -> 4x4; MaxPool2d(4,4) -> 1x1 (both squeezes fire)
OH, OW = H - 2, W - 2
P = OH * OW          # 16 conv-output positions per channel
HID = 32
EPS = 1e-5           # nn.BatchNorm1d default eps


def band_attention_kernel(x_flat_ref, wbig_ref, w1fc_ref, w2fc_ref, vec_ref,
                          out_ref, w1_out_ref, w2_out_ref):
    c = w2fc_ref.shape[1]
    hid = w1fc_ref.shape[1]
    hw = x_flat_ref.shape[1] // c

    # Packed small vectors: [conv_b(c) | fc1_b(hid) | fc2_b(c) | gamma(c) | beta(c)]
    vec = vec_ref[...]
    o = 0
    bc = vec[:, o:o + c]; o += c
    b1 = vec[:, o:o + hid]; o += hid
    b2 = vec[:, o:o + c]; o += c
    gamma = vec[:, o:o + c]; o += c
    beta = vec[:, o:o + c]

    # conv2d 3x3 (valid) as a SINGLE matmul against Toeplitz-expanded weights:
    # (N, C*H*W) @ (C*H*W, C*P) -> (N, C*P); one MXU push for the whole batch.
    x_flat = x_flat_ref[...]
    conv = jnp.dot(x_flat, wbig_ref[...],
                   preferred_element_type=jnp.float32)              # (N, C*P)
    p = conv.shape[1] // c

    # MaxPool2d(4,4) over the 4x4 conv map == global max per channel.
    # Bias added AFTER the max is valid because the pool is global and the bias
    # is a per-channel constant: max(a + b) == max(a) + b.
    cols = []
    for co in range(c):                                             # C=4, static loop
        cols.append(jnp.max(conv[:, co * p:(co + 1) * p], axis=1, keepdims=True))
    pooled = jnp.concatenate(cols, axis=1) + bc                     # (N, C)

    # fc1 -> sigmoid (exact) -> fc2
    h = jnp.dot(pooled, w1fc_ref[...], preferred_element_type=jnp.float32) + b1
    h = 1.0 / (1.0 + jnp.exp(-h))
    y = jnp.dot(h, w2fc_ref[...], preferred_element_type=jnp.float32) + b2

    # BatchNorm1d, training mode: batch statistics, biased variance.
    # TODO(synk): running-mean/var momentum updates are module state, not forward
    # outputs, so they are not produced here.
    mean = jnp.mean(y, axis=0, keepdims=True)
    var = jnp.mean((y - mean) ** 2, axis=0, keepdims=True)
    y_n = (y - mean) * lax.rsqrt(var + EPS) * gamma + beta

    # Final sigmoid: exp + approximate reciprocal both go to the EUP slot.
    w1 = pl.reciprocal(1.0 + jnp.exp(-y_n), approx=True)
    w2 = w1 * 0.5 + 0.5
    w1_out_ref[...] = w1
    w2_out_ref[...] = w2

    # Fused rescale on the SAME (N, C*H*W) layout as the conv input:
    # expand w2 (N, C) -> (N, C*H*W) via a tiny 0/1 expander matmul
    # (expander[ci, j] = 1 iff j // hw == ci), then one dense elementwise store.
    lane_idx = lax.broadcasted_iota(jnp.int32, (c, c * hw), 1)
    row_idx = lax.broadcasted_iota(jnp.int32, (c, c * hw), 0)
    lower = row_idx * hw
    exp_mat = jnp.logical_and(lane_idx >= lower,
                              lane_idx < lower + hw).astype(jnp.float32)
    w2_full = jnp.dot(w2, exp_mat, preferred_element_type=jnp.float32)  # (N, C*H*W)
    out_ref[...] = x_flat * w2_full


def _toeplitz_conv_matrix(conv_w, h, w):
    """(C_out, C_in, kh, kw) -> (C_in*H*W, C_out*OH*OW) so a valid conv becomes
    x.reshape(N, C*H*W) @ M.  Pure weight preprocessing — no data movement on x."""
    c_out, c_in, kh, kw = conv_w.shape
    oh, ow = h - kh + 1, w - kw + 1
    sel = np.zeros((kh * kw, h * w, oh * ow), np.float32)
    for ky in range(kh):
        for kx in range(kw):
            for i in range(oh):
                for j in range(ow):
                    sel[ky * kw + kx, (i + ky) * w + (j + kx), i * ow + j] = 1.0
    w9 = conv_w.reshape(c_out, c_in, kh * kw)
    t = jnp.einsum("ock,kqp->cqop", w9, jnp.asarray(sel))   # (C_in, H*W, C_out, OH*OW)
    return t.reshape(c_in * h * w, c_out * oh * ow)


@jax.jit
def band_attention_forward(x, params):
    n, c, h, w = x.shape
    oh, ow = h - 2, w - 2
    assert (oh, ow) == (4, 4)  # MaxPool2d(4,4) + the two squeezes require a 4x4 conv map
    hid = params["fc1_b"].shape[0]

    # Only free (contiguous) reshapes of x — no transposes / im2col HLOs in the wrapper.
    x_flat = x.reshape(n, c * h * w)                         # rows = sample, lanes = (ci,y,x)

    wbig = _toeplitz_conv_matrix(params["conv_w"], h, w)     # (C*H*W, C*OH*OW)
    w1fc = params["fc1_w"].T                                 # (C, 32)
    w2fc = params["fc2_w"].T                                 # (32, C)
    vec = jnp.concatenate([params["conv_b"], params["fc1_b"], params["fc2_b"],
                           params["bn_gamma"], params["bn_beta"]]).reshape(1, -1)

    # Gridless single invocation: total VMEM footprint is tiny (<64 KiB), so no
    # grid / tiling is needed.  If C, N or H*W grow, add a grid over N with
    # dimension_semantics=("parallel",) and lane-dense (multiple-of-128) outputs.
    vmem = pl.BlockSpec(memory_space=pltpu.MemorySpace.VMEM)
    out_flat, w1, w2 = pl.pallas_call(
        band_attention_kernel,
        in_specs=[vmem] * 5,
        out_specs=(vmem, vmem, vmem),
        out_shape=(jax.ShapeDtypeStruct((n, c * h * w), jnp.float32),
                   jax.ShapeDtypeStruct((n, c), jnp.float32),
                   jax.ShapeDtypeStruct((n, c), jnp.float32)),
    )(x_flat, wbig, w1fc, w2fc, vec)
    return out_flat.reshape(n, c, h, w), w1, w2


def band_attention_ref(x, params):
    # pure-JAX reference for the correctness check
    conv = lax.conv_general_dilated(
        x, params["conv_w"], window_strides=(1, 1), padding="VALID",
        dimension_numbers=("NCHW", "OIHW", "NCHW"))
    conv = conv + params["conv_b"][None, :, None, None]
    pooled = jnp.max(conv, axis=(2, 3))
    h = jax.nn.sigmoid(pooled @ params["fc1_w"].T + params["fc1_b"])
    y = h @ params["fc2_w"].T + params["fc2_b"]
    mean = jnp.mean(y, axis=0, keepdims=True)
    var = jnp.mean((y - mean) ** 2, axis=0, keepdims=True)
    y = (y - mean) / jnp.sqrt(var + EPS) * params["bn_gamma"] + params["bn_beta"]
    w1 = jax.nn.sigmoid(y)
    w2 = w1 * 0.5 + 0.5
    return x * w2[:, :, None, None], w1, w2


def init_params(key, num_bands):
    ks = jax.random.split(key, 8)
    return {
        "conv_w": 0.2 * jax.random.normal(ks[0], (num_bands, num_bands, 3, 3), jnp.float32),
        "conv_b": 0.1 * jax.random.normal(ks[1], (num_bands,), jnp.float32),
        "fc1_w": 0.2 * jax.random.normal(ks[2], (HID, num_bands), jnp.float32),
        "fc1_b": 0.1 * jax.random.normal(ks[3], (HID,), jnp.float32),
        "fc2_w": 0.2 * jax.random.normal(ks[4], (num_bands, HID), jnp.float32),
        "fc2_b": 0.1 * jax.random.normal(ks[5], (num_bands,), jnp.float32),
        "bn_gamma": 1.0 + 0.1 * jax.random.normal(ks[6], (num_bands,), jnp.float32),
        "bn_beta": 0.1 * jax.random.normal(ks[7], (num_bands,), jnp.float32),
    }


if __name__ == "__main__":
    key = jax.random.PRNGKey(0)
    kx, kp = jax.random.split(key)
    x = jax.random.normal(kx, (N, NUM_BANDS, H, W), jnp.float32)
    params = init_params(kp, NUM_BANDS)

    out, w1, w2 = jax.block_until_ready(band_attention_forward(x, params))
    out_r, w1_r, w2_r = band_attention_ref(x, params)

    assert out.shape == (N, NUM_BANDS, H, W)
    assert w1.shape == (N, NUM_BANDS) and w2.shape == (N, NUM_BANDS)
    assert jnp.allclose(out, out_r, atol=1e-2, rtol=1e-2)
    assert jnp.allclose(w1, w1_r, atol=1e-2, rtol=1e-2)
    assert jnp.allclose(w2, w2_r, atol=1e-2, rtol=1e-2)
    print("KERNEL_OK")
</pallas_src>

<mosaic_0001>
module attributes {stable_mosaic.version = 11 : i64} {
  func.func @band_attention_kernel(%arg0: memref<2x144xf32, #tpu.memory_space<vmem>>, %arg1: memref<144x64xf32, #tpu.memory_space<vmem>>, %arg2: memref<4x32xf32, #tpu.memory_space<vmem>>, %arg3: memref<32x4xf32, #tpu.memory_space<vmem>>, %arg4: memref<1x48xf32, #tpu.memory_space<vmem>>, %arg5: memref<2x144xf32, #tpu.memory_space<vmem>>, %arg6: memref<2x4xf32, #tpu.memory_space<vmem>>, %arg7: memref<2x4xf32, #tpu.memory_space<vmem>>) attributes {dimension_semantics = [], scalar_prefetch = 0 : i64, scratch_operands = 0 : i64, tpu.core_type = #tpu.core_type<tc>} {
    %c0 = arith.constant 0 : index
    %c0_0 = arith.constant 0 : index
    %0 = vector.load %arg4[%c0, %c0_0] : memref<1x48xf32, #tpu.memory_space<vmem>>, vector<1x48xf32>
    %1 = vector.extract_strided_slice %0 {offsets = [0, 0], sizes = [1, 4], strides = [1, 1]} : vector<1x48xf32> to vector<1x4xf32>
    %2 = vector.extract_strided_slice %0 {offsets = [0, 4], sizes = [1, 32], strides = [1, 1]} : vector<1x48xf32> to vector<1x32xf32>
    %3 = vector.extract_strided_slice %0 {offsets = [0, 36], sizes = [1, 4], strides = [1, 1]} : vector<1x48xf32> to vector<1x4xf32>
    %4 = vector.extract_strided_slice %0 {offsets = [0, 40], sizes = [1, 4], strides = [1, 1]} : vector<1x48xf32> to vector<1x4xf32>
    %5 = vector.extract_strided_slice %0 {offsets = [0, 44], sizes = [1, 4], strides = [1, 1]} : vector<1x48xf32> to vector<1x4xf32>
    %c0_1 = arith.constant 0 : index
    %c0_2 = arith.constant 0 : index
    %6 = vector.load %arg0[%c0_1, %c0_2] : memref<2x144xf32, #tpu.memory_space<vmem>>, vector<2x144xf32>
    %c0_3 = arith.constant 0 : index
    %c0_4 = arith.constant 0 : index
    %7 = vector.load %arg1[%c0_3, %c0_4] : memref<144x64xf32, #tpu.memory_space<vmem>>, vector<144x64xf32>
    %cst = arith.constant dense<0.000000e+00> : vector<2x64xf32>
    %8 = tpu.matmul %6, %7, %cst {dimension_numbers = #tpu.dot_dimension_numbers<[1], [0], [0], [1], [0, 0, 1, 1], [], []>} : vector<2x144xf32>, vector<144x64xf32>, vector<2x64xf32> -> vector<2x64xf32>
    %9 = vector.extract_strided_slice %8 {offsets = [0, 0], sizes = [2, 16], strides = [1, 1]} : vector<2x64xf32> to vector<2x16xf32>
    %cst_5 = arith.constant dense<0xFF800000> : vector<2xf32>
    %10 = vector.multi_reduction <maximumf>, %9, %cst_5 [1] : vector<2x16xf32> to vector<2xf32>
    %11 = vector.shape_cast %10 : vector<2xf32> to vector<2x1xf32>
    %12 = vector.extract_strided_slice %8 {offsets = [0, 16], sizes = [2, 16], strides = [1, 1]} : vector<2x64xf32> to vector<2x16xf32>
    %cst_6 = arith.constant dense<0xFF800000> : vector<2xf32>
    %13 = vector.multi_reduction <maximumf>, %12, %cst_6 [1] : vector<2x16xf32> to vector<2xf32>
    %14 = vector.shape_cast %13 : vector<2xf32> to vector<2x1xf32>
    %15 = vector.extract_strided_slice %8 {offsets = [0, 32], sizes = [2, 16], strides = [1, 1]} : vector<2x64xf32> to vector<2x16xf32>
    %cst_7 = arith.constant dense<0xFF800000> : vector<2xf32>
    %16 = vector.multi_reduction <maximumf>, %15, %cst_7 [1] : vector<2x16xf32> to vector<2xf32>
    %17 = vector.shape_cast %16 : vector<2xf32> to vector<2x1xf32>
    %18 = vector.extract_strided_slice %8 {offsets = [0, 48], sizes = [2, 16], strides = [1, 1]} : vector<2x64xf32> to vector<2x16xf32>
    %cst_8 = arith.constant dense<0xFF800000> : vector<2xf32>
    %19 = vector.multi_reduction <maximumf>, %18, %cst_8 [1] : vector<2x16xf32> to vector<2xf32>
    %20 = vector.shape_cast %19 : vector<2xf32> to vector<2x1xf32>
    %21 = tpu.concatenate %11, %14, %17, %20 in 1 : vector<2x1xf32>, vector<2x1xf32>, vector<2x1xf32>, vector<2x1xf32> -> vector<2x4xf32>
    %22 = vector.broadcast %1 : vector<1x4xf32> to vector<2x4xf32>
    %23 = arith.addf %21, %22 : vector<2x4xf32>
    %c0_9 = arith.constant 0 : index
    %c0_10 = arith.constant 0 : index
    %24 = vector.load %arg2[%c0_9, %c0_10] : memref<4x32xf32, #tpu.memory_space<vmem>>, vector<4x32xf32>
    %cst_11 = arith.constant dense<0.000000e+00> : vector<2x32xf32>
    %25 = tpu.matmul %23, %24, %cst_11 {dimension_numbers = #tpu.dot_dimension_numbers<[1], [0], [0], [1], [0, 0, 1, 1], [], []>} : vector<2x4xf32>, vector<4x32xf32>, vector<2x32xf32> -> vector<2x32xf32>
    %26 = vector.broadcast %2 : vector<1x32xf32> to vector<2x32xf32>
    %27 = arith.addf %25, %26 : vector<2x32xf32>
    %cst_12 = arith.constant 0.000000e+00 : f32
    %28 = vector.broadcast %cst_12 : f32 to vector<2x32xf32>
    %29 = arith.subf %28, %27 : vector<2x32xf32>
    %30 = math.exp %29 : vector<2x32xf32>
    %cst_13 = arith.constant 1.000000e+00 : f32
    %31 = vector.broadcast %cst_13 : f32 to vector<2x32xf32>
    %32 = arith.addf %31, %30 : vector<2x32xf32>
    %cst_14 = arith.constant 1.000000e+00 : f32
    %33 = vector.broadcast %cst_14 : f32 to vector<2x32xf32>
    %34 = arith.divf %33, %32 : vector<2x32xf32>
    %c0_15 = arith.constant 0 : index
    %c0_16 = arith.constant 0 : index
    %35 = vector.load %arg3[%c0_15, %c0_16] : memref<32x4xf32, #tpu.memory_space<vmem>>, vector<32x4xf32>
    %cst_17 = arith.constant dense<0.000000e+00> : vector<2x4xf32>
    %36 = tpu.matmul %34, %35, %cst_17 {dimension_numbers = #tpu.dot_dimension_numbers<[1], [0], [0], [1], [0, 0, 1, 1], [], []>} : vector<2x32xf32>, vector<32x4xf32>, vector<2x4xf32> -> vector<2x4xf32>
    %37 = vector.broadcast %3 : vector<1x4xf32> to vector<2x4xf32>
    %38 = arith.addf %36, %37 : vector<2x4xf32>
    %cst_18 = arith.constant dense<0.000000e+00> : vector<4xf32>
    %39 = vector.multi_reduction <add>, %38, %cst_18 [0] : vector<2x4xf32> to vector<4xf32>
    %40 = vector.shape_cast %39 : vector<4xf32> to vector<1x4xf32>
    %cst_19 = arith.constant 2.000000e+00 : f32
    %41 = vector.broadcast %cst_19 : f32 to vector<1x4xf32>
    %42 = arith.divf %40, %41 : vector<1x4xf32>
    %43 = vector.broadcast %42 : vector<1x4xf32> to vector<2x4xf32>
    %44 = arith.subf %38, %43 : vector<2x4xf32>
    %45 = arith.mulf %44, %44 : vector<2x4xf32>
    %cst_20 = arith.constant dense<0.000000e+00> : vector<4xf32>
    %46 = vector.multi_reduction <add>, %45, %cst_20 [0] : vector<2x4xf32> to vector<4xf32>
    %47 = vector.shape_cast %46 : vector<4xf32> to vector<1x4xf32>
    %cst_21 = arith.constant 2.000000e+00 : f32
    %48 = vector.broadcast %cst_21 : f32 to vector<1x4xf32>
    %49 = arith.divf %47, %48 : vector<1x4xf32>
    %50 = vector.broadcast %42 : vector<1x4xf32> to vector<2x4xf32>
    %51 = arith.subf %38, %50 : vector<2x4xf32>
    %cst_22 = arith.constant 9.99999974E-6 : f32
    %52 = vector.broadcast %cst_22 : f32 to vector<1x4xf32>
    %53 = arith.addf %49, %52 : vector<1x4xf32>
    %54 = math.rsqrt %53 : vector<1x4xf32>
    %55 = vector.broadcast %54 : vector<1x4xf32> to vector<2x4xf32>
    %56 = arith.mulf %51, %55 : vector<2x4xf32>
    %57 = vector.broadcast %4 : vector<1x4xf32> to vector<2x4xf32>
    %58 = arith.mulf %56, %57 : vector<2x4xf32>
    %59 = vector.broadcast %5 : vector<1x4xf32> to vector<2x4xf32>
    %60 = arith.addf %58, %59 : vector<2x4xf32>
    %cst_23 = arith.constant 0.000000e+00 : f32
    %61 = vector.broadcast %cst_23 : f32 to vector<2x4xf32>
    %62 = arith.subf %61, %60 : vector<2x4xf32>
    %63 = math.exp %62 : vector<2x4xf32>
    %cst_24 = arith.constant 1.000000e+00 : f32
    %64 = vector.broadcast %cst_24 : f32 to vector<2x4xf32>
    %65 = arith.addf %64, %63 : vector<2x4xf32>
    %66 = tpu.reciprocal %65 {approx = true} : vector<2x4xf32> -> vector<2x4xf32>
    %cst_25 = arith.constant 5.000000e-01 : f32
    %67 = vector.broadcast %cst_25 : f32 to vector<2x4xf32>
    %68 = arith.mulf %66, %67 : vector<2x4xf32>
    %cst_26 = arith.constant 5.000000e-01 : f32
    %69 = vector.broadcast %cst_26 : f32 to vector<2x4xf32>
    %70 = arith.addf %68, %69 : vector<2x4xf32>
    %c0_27 = arith.constant 0 : index
    %c0_28 = arith.constant 0 : index
    %71 = vector.load %arg6[%c0_27, %c0_28] : memref<2x4xf32, #tpu.memory_space<vmem>>, vector<2x4xf32>
    tpu.vector_store %arg6[%c0_27, %c0_28], %66 {strides = array<i32>} : memref<2x4xf32, #tpu.memory_space<vmem>>, vector<2x4xf32>,
    %c0_29 = arith.constant 0 : index
    %c0_30 = arith.constant 0 : index
    %72 = vector.load %arg7[%c0_29, %c0_30] : memref<2x4xf32, #tpu.memory_space<vmem>>, vector<2x4xf32>
    tpu.vector_store %arg7[%c0_29, %c0_30], %70 {strides = array<i32>} : memref<2x4xf32, #tpu.memory_space<vmem>>, vector<2x4xf32>,
    %73 = tpu.iota {dimensions = array<i32: 1>} : vector<4x144xi32>
    %74 = tpu.iota {dimensions = array<i32: 0>} : vector<4x144xi32>
    %c36_i32 = arith.constant 36 : i32
    %75 = vector.broadcast %c36_i32 : i32 to vector<4x144xi32>
    %76 = arith.muli %74, %75 : vector<4x144xi32>
    %77 = arith.cmpi sge, %73, %76 : vector<4x144xi32>
    %c36_i32_31 = arith.constant 36 : i32
    %78 = vector.broadcast %c36_i32_31 : i32 to vector<4x144xi32>
    %79 = arith.addi %76, %78 : vector<4x144xi32>
    %80 = arith.cmpi slt, %73, %79 : vector<4x144xi32>
    %81 = arith.andi %77, %80 : vector<4x144xi1>
    %82 = arith.extui %81 : vector<4x144xi1> to vector<4x144xi32>
    %83 = arith.sitofp %82 : vector<4x144xi32> to vector<4x144xf32>
    %cst_32 = arith.constant dense<0.000000e+00> : vector<2x144xf32>
    %84 = tpu.matmul %70, %83, %cst_32 {dimension_numbers = #tpu.dot_dimension_numbers<[1], [0], [0], [1], [0, 0, 1, 1], [], []>} : vector<2x4xf32>, vector<4x144xf32>, vector<2x144xf32> -> vector<2x144xf32>
    %85 = arith.mulf %6, %84 : vector<2x144xf32>
    %c0_33 = arith.constant 0 : index
    %c0_34 = arith.constant 0 : index
    %86 = vector.load %arg5[%c0_33, %c0_34] : memref<2x144xf32, #tpu.memory_space<vmem>>, vector<2x144xf32>
    tpu.vector_store %arg5[%c0_33, %c0_34], %85 {strides = array<i32>} : memref<2x144xf32, #tpu.memory_space<vmem>>, vector<2x144xf32>,
    return
  }
}

</mosaic_0001>

<bundles_post_ra>
// kernel: band_attention_forward.1
= control target key start
LH: loop header
LB: loop body
LE: loop exit
PB: predicated region body
PF: predicated region fallthrough
CT: control target
= control target key end

     0   :  { %13 = vsyncpa [#allocation3], 0  ;;  %s597_s0 = inlined_call_operand.vmem [shape: f32[2,144], index: 0, kind: input, shape index: {}]   ;;  %s598_s1 = inlined_call_operand.vmem [shape: f32[144,64], index: 1, kind: input, shape index: {}]   ;;  %s599_s2 = inlined_call_operand.vmem [shape: f32[4,32], index: 2, kind: input, shape index: {}]   ;;  %s600_s3 = inlined_call_operand.vmem [shape: f32[32,4], index: 3, kind: input, shape index: {}]   ;;  %s601_s4 = inlined_call_operand.vmem [shape: f32[1,48], index: 4, kind: input, shape index: {}]   ;;  %s602_s5 = inlined_call_operand.vmem [shape: f32[2,144], index: 5, kind: output, shape index: {0}]   ;;  %s603_s6 = inlined_call_operand.hbm [shape: f32[2,4], index: 6, kind: output, shape index: {1}]   ;;  %s604_s7 = inlined_call_operand.hbm [shape: f32[2,4], index: 7, kind: output, shape index: {2}]  }
   0x1   :  { %v42_v0 = vld [vmem:[%s598_s1 + $0x78] sm:$0xff]  ;;  %v41_v1 = vld [vmem:[%s598_s1 + $0x70] sm:$0xff]  ;;  %v40_v2 = vld [vmem:[%s598_s1 + $0x68] sm:$0xff] }
   0x2   :  { %53 = vmatpush.msra.mxu0 %v42_v0  ;;  %v39_v3 = vld [vmem:[%s598_s1 + $0x60] sm:$0xff]  ;;  %v38_v4 = vld [vmem:[%s598_s1 + $0x58] sm:$0xff]  ;;  %v44_v5 = vld [vmem:[%s598_s1 + $0x88] sm:$0xff] }
   0x3   :  { %v43_v6 = vld [vmem:[%s598_s1 + $0x80] sm:$0xff]  ;;  %87 = vmatpush.msra.mxu1 %v44_v5 }
   0x4   :  { %54 = vmatpush.msra.mxu0 %v41_v1  ;;  %v523_v7 = vld [vmem:[%s597_s0] sm:$0xf] }
   0x6   :  { %55 = vmatpush.msra.mxu0 %v40_v2 }
   0x7   :  { %14 = vsyncpa [#allocation5], 0  ;;  %46 = vst [vmem:[#allocation1] ss:$4 sm:$0xff] %v523_v7  ;;  %v37_v8 = vld [vmem:[%s598_s1 + $0x50] sm:$0xff]  ;;  %88 = vmatpush.msra.mxu1 %v43_v6  ;;  %v36_v9 = vld [vmem:[%s598_s1 + $0x48] sm:$0xff] }
   0x8   :  { %56 = vmatpush.msra.mxu0 %v39_v3  ;;  %v35_v10 = vld [vmem:[%s598_s1 + $0x40] sm:$0xff]  ;;  %vm50_vm0 = vcmask 130048   ;;  %v34_v11 = vld [vmem:[%s598_s1 + $0x38] sm:$0xff]  ;;  %v33_v13 = vld [vmem:[%s598_s1 + $0x30] sm:$0xff]  ;;  %vm101_vm1 = vcmask 386304   ;;  %vm93_vm2 = vcmask 123904  }
   0x9   :  { %v32_v14 = vld [vmem:[%s598_s1 + $0x28] sm:$0xff]  ;;  %v31_v15 = vld [vmem:[%s598_s1 + $0x20] sm:$0xff]  ;;  %v30_v16 = vld [vmem:[%s598_s1 + $0x18] sm:$0xff]  ;;  %vm105_vm3 = vcmask 517504   ;;  %vm97_vm4 = vcmask 255104   ;;  %vm127_vm5 = vcmask 1043456  }
   0xa   :  { %57 = vmatpush.msra.mxu0 %v38_v4  ;;  %v29_v17 = vld [vmem:[%s598_s1 + $0x10] sm:$0xff]  ;;  %v28_v18 = vld [vmem:[%s598_s1 + $0x8] sm:$0xff]  ;;  %v27_v19 = vld [vmem:[%s598_s1] sm:$0xff]  ;;  %s451_s18 = smov 124   ;;  %vm109_vm6 = vcmask 7168   ;;  %vm111_vm7 = vcmask 15360  }
   0xb   :  { %v119_v28 = vld [vmem:[%s599_s2] sm:$0xf]  ;;  %vm113_vm8 = vcmask 23552   ;;  %vm123_vm9 = vcmask 31744   ;;  %s452_s2 = smov 92   ;;  %s454_s19 = smov 84  }
   0xc   :  { %58 = vmatpush.msra.mxu0 %v37_v8  ;;  %v386_v29 = vld [vmem:[%s601_s4] ss:$0 sm:$0xff]  ;;  %369 = vmatpush.msk.msra.mxu2 %vm127_vm5, %v119_v28  ;;  %s453_s4 = smov 88   ;;  %v173_v38 = vld [vmem:[%s600_s3 + $0x18] sm:$0xff]  ;;  %v172_v39 = vld [vmem:[%s600_s3 + $0x10] sm:$0xff]  ;;  %vm177_vm13 = vcmask 261120  }
   0xd   :  { %120 = vrot.lane.b32.xlu2 %v386_v29, %s451_s18  ;;  %193 = vmatpush.msra.mxu3 %v173_v38  ;;  %v171_v40 = vld [vmem:[%s600_s3 + $0x8] sm:$0xff]  ;;  %v170_v41 = vld [vmem:[%s600_s3] sm:$0xff]  ;;  %v455_v59 = vmov 2.0   ;;  %vm201_vm15 = vcmask 25600   ;;  %s457_s3 = smov [#allocation2]   ;;  %s341_s30 = sshll.u32 %s603_s6, 4  ;;  %s342_s30 = int_to_ptr.hbm [resolvable:$true] %s341_s30 }
   0xe   :  { %59 = vmatpush.msra.mxu0 %v36_v9  ;;  %v48_v12 = vld.sshfl [vmem:[#allocation1 + $0x8] sm:$0xff pattern:$0x73625140]  ;;  %v47_v20 = vld.sshfl [vmem:[#allocation1] sm:$0xff pattern:$0x73625140] }
   0xf   :  { %368 = vmatmul.msk.f32.vlgmr.msra.gmra.mxu1 %vm50_vm0, %v48_v12  ;;  %194 = vmatpush.msra.mxu3 %v172_v39  ;;  %s339_s27 = sshll.u32 %s457_s3, 4  ;;  %s458_s8 = smov [#allocation4]   ;;  %s340_s27 = int_to_ptr.vmem [resolvable:$true] %s339_s27 }
  0x10   :  { %60 = vmatpush.msra.mxu0 %v35_v10  ;;  %s350_s9 = sshll.u32 %s458_s8, 4  ;;  %s352_s12 = sshll.u32 %s604_s7, 4  ;;  %s351_s9 = int_to_ptr.vmem [resolvable:$true] %s350_s9  ;;  %s353_s12 = int_to_ptr.hbm [resolvable:$true] %s352_s12 }
  0x11   :  { %195 = vmatpush.msra.mxu3 %v171_v40 }
  0x12   :  { %61 = vmatpush.msra.mxu0 %v34_v11 }
  0x13   :  { %196 = vmatpush.msra.mxu3 %v170_v41 }
  0x14   :  { %62 = vmatpush.msra.mxu0 %v33_v13 }
  0x15   :  { %174 = vrot.lane.b32.xlu2 %v386_v29, %s452_s2 }
  0x16   :  { %63 = vmatpush.msra.mxu0 %v32_v14 }
  0x18   :  { %64 = vmatpush.msra.mxu0 %v31_v15 }
  0x1a   :  { %65 = vmatpush.msra.mxu0 %v30_v16 }
  0x1c   :  { %66 = vmatpush.msra.mxu0 %v29_v17 }
  0x1e   :  { %67 = vmatpush.msra.mxu0 %v28_v18 }
  0x20   :  { %68 = vmatpush.msra.mxu0 %v27_v19 }
  0x21   :  { %69 = vmatmul.f32.vlgmr.msra.gmra.mxu0 %v47_v20 }
  0x67   :  { %v121_v42 = vpop.permute.xlu2 %120 }
  0x6f   :  { %v175_v62 = vpop.permute.xlu2 %174 }
  0x8c   :  { %v90_v21 = vpop.f32.mrf.mxu1 }
  0x9e   :  { %v70_v22 = vpop.f32.mrf.mxu0 }
  0x9f   :  { %v91_v23 = vadd.f32 %v90_v21, %v70_v22 }
  0xa1   :  { %v102_v24 = vsel %vm101_vm1, %v91_v23, -inf  ;;  %v94_v25 = vsel %vm93_vm2, %v91_v23, -inf  ;;  %v106_v26 = vsel %vm105_vm3, %v91_v23, -inf  ;;  %v98_v27 = vsel %vm97_vm4, %v91_v23, -inf }
  0xa2   :  { %103 = vmax.xlane.f32.xlu1 %v102_v24  ;;  %95 = vmax.xlane.f32.xlu0 %v94_v25  ;;  %v256_v25 = vlaneseq }
  0xaa   :  { %107 = vmax.xlane.f32.xlu1 %v106_v26  ;;  %99 = vmax.xlane.f32.xlu0 %v98_v27  ;;  %v260_v27 = vshrl.u32 %v256_v25, 7 }
  0xbe   :  { %239 = vrot.lane.b32.xlu0 %v386_v29, %s453_s4 }
  0xc3   :  { %243 = vrot.lane.b32.xlu1 %v386_v29, %s454_s19 }
 0x115   :  { %v104_v30 = vpop.xlane.xlu1 %103  ;;  %v96_v31 = vpop.xlane.xlu0 %95 }
 0x11d   :  { %v100_v32 = vpop.xlane.xlu0 %99  ;;  %v108_v34 = vpop.xlane.xlu1 %107 }
 0x11e   :  { %v110_v33 = vsel %vm109_vm6, %v96_v31, %v100_v32 }
 0x11f   :  { %v112_v35 = vsel %vm111_vm7, %v110_v33, %v104_v30  ;;  %v261_v30 = vmul.u32 36, %v260_v27 }
 0x120   :  { %v114_v36 = vsel %vm113_vm8, %v112_v35, %v108_v34 }
 0x121   :  { %v118_v37 = vadd.f32 %v386_v29, %v114_v36  ;;  %v257_v29 = vand.u32 127, %v256_v25  ;;  %v264_v32 = vadd.s32 36, %v261_v30  ;;  %v456_v36 = vmov 0.0  }
 0x123   :  { %370 = vmatmul.msk.f32.vlgmr.msra.gmra.mxu2 %vm123_vm9, %v118_v37  ;;  %v258_v33 = vadd.s32 128, %v257_v29  ;;  %vm262_vm1 = vcmp.ge.s32.totalorder %v257_v29, %v261_v30  ;;  %vm265_vm2 = vcmp.lt.s32.totalorder %v257_v29, %v264_v32 }
 0x124   :  { %vm267_vm6 = vmand %vm262_vm1, %vm265_vm2 }
 0x125   :  { %vm263_vm3 = vcmp.ge.s32.totalorder %v258_v33, %v261_v30  ;;  %vm266_vm7 = vcmp.lt.s32.totalorder %v258_v33, %v264_v32  ;;  %v372_v37 = vsel %vm267_vm6, 1.0, %v456_v36 }
 0x126   :  { %vm268_vm8 = vmand %vm263_vm3, %vm266_vm7  ;;  %374 = vmatpush.msk.msrb.mxu2 %vm127_vm5, %v372_v37 }
 0x127   :  { %v373_v39 = vsel %vm268_vm8, 1.0, %v456_v36 }
 0x128   :  { %376 = vmatpush.msk.msrb.mxu1 %vm127_vm5, %v373_v39  ;;  %vm325_vm5 = vcmask 1041408  }
 0x130   :  { %v240_v40 = vpop.permute.xlu0 %239 }
 0x1a6   :  { %v148_v43 = vpop.f32.mrf.mxu2 }
 0x1a7   :  { %v149_v44 = vadd.f32 %v148_v43, %v121_v42  ;;  %v244_v43 = vpop.permute.xlu1 %243 }
 0x1a9   :  { %v151_v45 = vsub.f32 0.0, %v149_v44 }
 0x1ab   :  { %v152_v46 = vmul.f32 1.442695, %v151_v45 }
 0x1ad   :  { %387 = vpow2.f32 %v152_v46 }
 0x1b3   :  { %v388_v47 = vpop.eup %387 }
 0x1b4   :  { %v154_v48 = vadd.f32 1.0, %v388_v47 }
 0x1b6   :  { %389 = vrcp.f32 %v154_v48  ;;  %v166_v52 = vand.u32 2147483648, %v154_v48  ;;  %v164_v54 = vand.u32 2147483647, %v154_v48  ;;  %vm160_vm11 = vweird.f32 %v154_v48 }
 0x1b7   :  { %391 = vrcp.f32 %v455_v59 }
 0x1b8   :  { %v167_v56 = vor.u32 1.1754944e-38, %v166_v52  ;;  %vm165_vm14 = vcmp.eq.f32.partialorder %v164_v54, 8.507059e+37 }
 0x1bc   :  { %v390_v49 = vpop.eup %389 }
 0x1bd   :  { %v156_v50 = vmul.f32 %v390_v49, %v154_v48  ;;  %vm161_vm10 = vweird.f32 %v390_v49  ;;  %v392_v60 = vpop.eup %391 }
 0x1be   :  { %vm162_vm12 = vmor %vm160_vm11, %vm161_vm10  ;;  %v210_v61 = vmul.f32 2.0, %v392_v60  ;;  %vm214_vm0 = vweird.f32 %v392_v60 }
 0x1bf   :  { %v157_v51 = vsub.f32 1.0, %v156_v50 }
 0x1c0   :  { %v211_v1 = vsub.f32 1.0, %v210_v61 }
 0x1c1   :  { %v158_v53 = vmul.f32 %v390_v49, %v157_v51 }
 0x1c2   :  { %v212_v4 = vmul.f32 %v392_v60, %v211_v1 }
 0x1c3   :  { %v159_v55 = vadd.f32 %v390_v49, %v158_v53 }
 0x1c4   :  { %v213_v8 = vadd.f32 %v392_v60, %v212_v4 }
 0x1c5   :  { %v163_v57 = vsel %vm162_vm12, %v390_v49, %v159_v55 }
 0x1c6   :  { %v168_v58 = vsel %vm165_vm14, %v167_v56, %v163_v57  ;;  %v215_v11 = vsel %vm214_vm0, %v392_v60, %v213_v8 }
 0x1c7   :  { %371 = vmatmul.msk.f32.vlgmr.msra.gmra.mxu3 %vm177_vm13, %v168_v58 }
 0x24a   :  { %v198_v63 = vpop.f32.mrf.mxu3 }
 0x24b   :  { %v199_v0 = vadd.f32 %v198_v63, %v175_v62 }
 0x24d   :  { %v202_v2 = vsel %vm201_vm15, %v199_v0, 0.0 }
 0x24e   :  { %v203_v3 = vrot.slane %v202_v2, 4 }
 0x250   :  { %v204_v5 = vadd.f32 %v203_v3, %v202_v2 }
 0x252   :  { %v205_v6 = vrot.slane %v204_v5, 2 }
 0x254   :  { %v206_v9 = vadd.f32 %v205_v6, %v204_v5 }
 0x256   :  { %v207_v10 = vrot.slane %v206_v9, 1 }
 0x258   :  { %v208_v12 = vadd.f32 %v207_v10, %v206_v9 }
 0x25a   :  { %v216_v13 = vmul.f32 %v215_v11, %v208_v12 }
 0x25c   :  { %v217_v14 = vsub.f32 %v199_v0, %v216_v13 }
 0x25e   :  { %v218_v15 = vmul.f32 %v217_v14, %v217_v14 }
 0x260   :  { %v219_v16 = vsel %vm201_vm15, %v218_v15, 0.0 }
 0x261   :  { %v220_v17 = vrot.slane %v219_v16, 4 }
 0x263   :  { %v221_v18 = vadd.f32 %v220_v17, %v219_v16 }
 0x265   :  { %v222_v19 = vrot.slane %v221_v18, 2 }
 0x267   :  { %v223_v20 = vadd.f32 %v222_v19, %v221_v18 }
 0x269   :  { %v224_v21 = vrot.slane %v223_v20, 1 }
 0x26b   :  { %v225_v22 = vadd.f32 %v224_v21, %v223_v20 }
 0x26d   :  { %v226_v23 = vmul.f32 %v225_v22, %v215_v11 }
 0x26f   :  { %v227_v24 = vadd.f32 1e-05, %v226_v23 }
 0x271   :  { %393 = vrsqrt.f32 %v227_v24  ;;  %vm234_vm10 = vweird.f32 %v227_v24 }
 0x277   :  { %v394_v26 = vpop.eup %393 }
 0x278   :  { %v229_v28 = vmul.f32 %v394_v26, %v227_v24  ;;  %vm235_vm4 = vweird.f32 %v394_v26 }
 0x279   :  { %vm236_vm11 = vmor %vm234_vm10, %vm235_vm4 }
 0x27a   :  { %v230_v31 = vmul.f32 %v394_v26, %v229_v28 }
 0x27c   :  { %v231_v34 = vmul.f32 0.5, %v230_v31 }
 0x27e   :  { %v232_v35 = vsub.f32 1.5, %v231_v34 }
 0x280   :  { %v233_v38 = vmul.f32 %v394_v26, %v232_v35 }
 0x282   :  { %v237_v41 = vsel %vm236_vm11, %v394_v26, %v233_v38 }
 0x283   :  { %v238_v42 = vmul.f32 %v237_v41, %v217_v14 }
 0x285   :  { %v242_v44 = vmul.f32 %v240_v40, %v238_v42 }
 0x287   :  { %v246_v45 = vadd.f32 %v244_v43, %v242_v44 }
 0x289   :  { %v247_v46 = vsub.f32 0.0, %v246_v45 }
 0x28b   :  { %v248_v47 = vmul.f32 1.442695, %v247_v46 }
 0x28d   :  { %395 = vpow2.f32 %v248_v47 }
 0x293   :  { %v396_v48 = vpop.eup %395 }
 0x294   :  { %v250_v49 = vadd.f32 1.0, %v396_v48 }
 0x296   :  { %397 = vrcp.f32 %v250_v49 }
 0x29c   :  { %v398_v50 = vpop.eup %397 }
 0x29d   :  { %254 = vst.msk [vmem:[#allocation2] sm:$0x3] %vm201_vm15, %v398_v50  ;;  %v252_v51 = vmul.f32 0.5, %v398_v50 }
 0x29e   :  { %344 = dma.vmem_to_hbm [thread:$0]  %s340_s27, 32, %s342_s30, [#allocation3]  }
 0x29f   :  { %v253_v52 = vadd.f32 0.5, %v252_v51 }
 0x2a1   :  { %375 = vmatmul.msk.f32.vlgmr.msrb.gmra.mxu2 %vm123_vm9, %v253_v52  ;;  %255 = vst.msk [vmem:[#allocation4] sm:$0x3] %vm201_vm15, %v253_v52  ;;  %377 = vmatmul.msk.f32.vlgmr.msrb.gmra.mxu1 %vm123_vm9, %v253_v52  ;;  %vm329_vm9 = vcmask 125954  }
 0x2a2   :  { %355 = dma.vmem_to_hbm [thread:$0]  %s351_s9, 32, %s353_s12, [#allocation5]   ;;  %vm330_vm12 = vmor %vm329_vm9, %vm325_vm5 }
 0x31e   :  { %v319_v53 = vpop.f32.mrf.mxu1 }
 0x31f   :  { %v324_v54 = vrot.slane %v319_v53, 6 }
 0x324   :  { %v299_v55 = vpop.f32.mrf.mxu2 }
 0x325   :  { %v326_v56 = vsel %vm325_vm5, %v299_v55, %v324_v54 }
 0x326   :  { %v328_v57 = vmul.f32 %v326_v56, %v523_v7 }
 0x328   :  { %331 = vst.msk [vmem:[%s602_s5] sm:$0xf] %vm330_vm12, %v328_v57 }
 0x329   :  { %447 = dma.done.wait [#allocation3], 32  }
 0x32a   :  { %448 = vsyncadd [#allocation3], 4294967264 }
 0x32b   :  { %449 = dma.done.wait [#allocation5], 32  }
 0x32c   :  { %450 = vsyncadd [#allocation5], 4294967264 }
 0x32d   :  { %366 = vsyncpa [#allocation3], 1 }
 0x32e   :  { %367 = vsyncpa [#allocation5], 1 }

</bundles_post_ra>
